<compile_context>
chip_gen: v5e
topology: v5e:2x2
jax: 0.10.0
libtpu: 0.0.40
codegen_flags: <defaults>
</compile_context>

<pallas_src>
from typing import NamedTuple

import jax
import jax.numpy as jnp
from jax.experimental import pallas as pl
from jax.experimental.pallas import tpu as pltpu

_DEFAULT_VMEM_BUDGET = 12 * 1024 * 1024   # conservative across v5e/v6e/v7x
_DEFAULT_BATCH_TILE = 1024


def _round_up(x, m):
    return ((x + m - 1) // m) * m


class PackedLinear(NamedTuple):
    mode: str          # "lane_dense" | "general"
    w: jax.Array       # lane_dense: (g*D_in, 128) = kron(I_g, Wp^T); general: (D_in, D_out) = W^T
    b: jax.Array       # lane_dense: (1, 128) tiled bias; general: (1, D_out)
    d_in: int
    d_out: int
    g: int             # batch rows folded per 128-lane output row (1 on general path)
    d_pad: int         # padded D_out used inside the lane-dense kernel


# --------------------------------------------------------------------------- kernels

def _lane_dense_kernel(xf_ref, wf_ref, bf_ref, of_ref):
    # xf: (TB, g*D_in) folded x tile; wf: (g*D_in, 128) block-diag weight;
    # bf: (1, 128); of: (TB, 128) -> full unmasked 128-lane stores.
    acc = jnp.dot(xf_ref[...], wf_ref[...], preferred_element_type=jnp.float32)
    of_ref[...] = (acc + bf_ref[...].astype(jnp.float32)).astype(of_ref.dtype)


def _matmul_bias_kernel(x_ref, wt_ref, b_ref, o_ref, acc_ref):
    # Tiled (TB,TK)@(TK,TN) with f32 VMEM accumulator over the K grid axis.
    @pl.when(pl.program_id(2) == 0)
    def _init():
        acc_ref[...] = jnp.zeros_like(acc_ref)

    acc_ref[...] += jnp.dot(x_ref[...], wt_ref[...],
                            preferred_element_type=jnp.float32)

    @pl.when(pl.program_id(2) == pl.num_programs(2) - 1)
    def _finalize():
        o_ref[...] = (acc_ref[...] + b_ref[...].astype(jnp.float32)).astype(o_ref.dtype)


# --------------------------------------------------------------------------- tiling helpers

def _choose_tk(d_in):
    """K tile: must divide D_in exactly (K-tail blocks would feed garbage into the
    accumulation) and be a multiple of 128, or just be the whole K axis."""
    if d_in <= 1024:
        return int(d_in)
    for cand in (1024, 896, 768, 640, 512, 384, 256, 128):
        if d_in % cand == 0:
            return cand
    # TODO(synk): D_in with no multiple-of-128 factor keeps the whole K axis
    # resident; a masked-K accumulation variant would tile it as well.
    return int(d_in)


def _choose_tb(n_rows, row_in_elems, row_out_elems, fixed_bytes, itemsize,
               batch_tile, vmem_budget):
    """Largest multiple-of-8 batch tile whose double-buffered tiles fit the budget."""
    per_row = 2 * (row_in_elems + row_out_elems) * itemsize + row_out_elems * 4  # +f32 acc
    avail = max(int(vmem_budget) - int(fixed_bytes), 8 * per_row)
    tb = min(int(batch_tile), max(8, avail // per_row))
    tb = max(8, (tb // 8) * 8)
    tb = min(tb, _round_up(int(n_rows), 8))
    return int(tb)


# --------------------------------------------------------------------------- forward paths

def _forward_general(x2, p, batch_tile, vmem_budget):
    B, D_in = x2.shape
    D_out = p.d_out
    wt, b2 = p.w, p.b                       # (D_in, D_out), (1, D_out)
    itemsize = jnp.dtype(wt.dtype).itemsize

    TN = D_out if D_out < 128 else min(512, (D_out // 128) * 128)
    TK = _choose_tk(D_in)
    fixed = 2 * (TK * TN + TN) * itemsize   # double-buffered weight + bias tiles
    TB = _choose_tb(B, TK, TN, fixed, itemsize, batch_tile, vmem_budget)

    nn = pl.cdiv(D_out, TN)
    # v7x has 2 TensorCores: give the "parallel" axes at least 2 steps when possible.
    if nn * pl.cdiv(B, TB) == 1 and B > 8:
        TB = max(8, _round_up(pl.cdiv(B, 2), 8))
    nb = pl.cdiv(B, TB)
    nk = pl.cdiv(D_in, TK)

    est_vmem = 2 * (TB * TK + TK * TN + TN + TB * TN) * itemsize + TB * TN * 4
    cparams = dict(dimension_semantics=("parallel", "parallel", "arbitrary"))
    if est_vmem > 24 * 1024 * 1024:
        cparams["vmem_limit_bytes"] = int(est_vmem * 1.25)

    cost = pl.CostEstimate(
        flops=int(2 * B * D_in * D_out),
        transcendentals=0,
        bytes_accessed=int((B * D_in * nn + D_in * D_out + D_out + B * D_out) * itemsize))

    return pl.pallas_call(
        _matmul_bias_kernel,
        out_shape=jax.ShapeDtypeStruct((B, D_out), jnp.float32),
        grid=(nb, nn, nk),
        in_specs=[
            pl.BlockSpec((TB, TK), lambda i, j, k: (i, k)),
            pl.BlockSpec((TK, TN), lambda i, j, k: (k, j)),
            pl.BlockSpec((1, TN), lambda i, j, k: (0, j)),
        ],
        out_specs=pl.BlockSpec((TB, TN), lambda i, j, k: (i, j)),
        scratch_shapes=[pltpu.VMEM((TB, TN), jnp.float32)],
        compiler_params=pltpu.CompilerParams(**cparams),
        cost_estimate=cost,
    )(x2, wt, b2)


def _forward_lane_dense(x2, p, batch_tile, vmem_budget):
    B, D_in = x2.shape
    g, Dp = p.g, p.d_pad
    itemsize = jnp.dtype(p.w.dtype).itemsize

    B_pad = _round_up(max(B, 1), g)
    if B_pad != B:
        x2 = jnp.pad(x2, ((0, B_pad - B), (0, 0)))   # pad batch instead of masked-store fallback
    Bf = B_pad // g
    K = g * D_in
    xf = x2.reshape(Bf, K)                           # row-major fold: byte-identical / free

    fixed = 2 * (K * 128 + 128) * itemsize           # resident folded weight + bias (2 buffers)
    TB = _choose_tb(Bf, K, 128, fixed, itemsize, batch_tile, vmem_budget)
    if pl.cdiv(Bf, TB) == 1 and Bf > 8:              # v7x: keep both TensorCores busy
        TB = max(8, _round_up(pl.cdiv(Bf, 2), 8))

    cost = pl.CostEstimate(                          # actual (inflated) kernel work
        flops=int(2 * Bf * K * 128),
        transcendentals=0,
        bytes_accessed=int((Bf * K + K * 128 + 128 + Bf * 128) * itemsize))

    out_f = pl.pallas_call(
        _lane_dense_kernel,
        out_shape=jax.ShapeDtypeStruct((Bf, 128), jnp.float32),
        grid=(pl.cdiv(Bf, TB),),
        in_specs=[
            pl.BlockSpec((TB, K), lambda i: (i, 0)),
            pl.BlockSpec((K, 128), lambda i: (0, 0)),
            pl.BlockSpec((1, 128), lambda i: (0, 0)),
        ],
        out_specs=pl.BlockSpec((TB, 128), lambda i: (i, 0)),
        compiler_params=pltpu.CompilerParams(dimension_semantics=("parallel",)),
        cost_estimate=cost,
    )(xf, p.w, p.b)

    out = out_f.reshape(B_pad, Dp)                   # free reshape back
    if B_pad != B or Dp != p.d_out:
        out = out[:B, :p.d_out]
    return out


# --------------------------------------------------------------------------- public API

def pack_linear_params(weight, bias, *, compute_dtype=jnp.float32,
                       lane_dense=True, vmem_budget_bytes=_DEFAULT_VMEM_BUDGET):
    """One-time parameter preparation. Call once per weight; reuse the result
    across forward calls (hoists the kron / transpose prep out of the hot path)."""
    weight = jnp.asarray(weight)
    bias = jnp.asarray(bias)
    D_out, D_in = weight.shape
    w = weight.astype(compute_dtype)
    b = bias.astype(compute_dtype)
    itemsize = jnp.dtype(compute_dtype).itemsize

    if lane_dense and D_out < 128:
        Dp = 1 << max(0, (D_out - 1).bit_length())   # next pow2 -> divides 128
        g = 128 // Dp
        # Only fold if the resident, double-buffered block-diag weight stays small
        # (guards the 128/D_out FLOP/byte inflation on v5e and VMEM on v7x).
        if 2 * g * D_in * 128 * itemsize <= vmem_budget_bytes // 2:
            wp = w if Dp == D_out else jnp.pad(w, ((0, Dp - D_out), (0, 0)))
            bp = b if Dp == D_out else jnp.pad(b, ((0, Dp - D_out),))
            wf = jnp.kron(jnp.eye(g, dtype=compute_dtype), wp.T)   # (g*D_in, 128)
            bf = jnp.tile(bp, g).reshape(1, 128)
            return PackedLinear("lane_dense", wf, bf, int(D_in), int(D_out), int(g), int(Dp))

    # General path: pre-transpose ONCE so the kernel is a plain (M,K)@(K,N) MXU matmul.
    return PackedLinear("general", w.T, b.reshape(1, D_out), int(D_in), int(D_out), 1, int(D_out))


def linear_forward_packed(x, params, *, batch_tile=_DEFAULT_BATCH_TILE,
                          vmem_budget_bytes=_DEFAULT_VMEM_BUDGET):
    x = jnp.asarray(x)
    lead = x.shape[:-1]
    x2 = x.reshape(-1, params.d_in)
    if x2.dtype != params.w.dtype:
        x2 = x2.astype(params.w.dtype)               # bf16-compute variant if requested
    if params.mode == "lane_dense":
        out = _forward_lane_dense(x2, params, batch_tile, vmem_budget_bytes)
    else:
        out = _forward_general(x2, params, batch_tile, vmem_budget_bytes)
    return out.reshape(*lead, params.d_out)


def linear_forward(x, weight, bias, *, compute_dtype=jnp.float32,
                   batch_tile=_DEFAULT_BATCH_TILE,
                   vmem_budget_bytes=_DEFAULT_VMEM_BUDGET):
    """Equivalent of torch.nn.Linear(input_dim, output_dim)(x). For repeated calls
    with the same weights prefer pack_linear_params + linear_forward_packed."""
    params = pack_linear_params(weight, bias, compute_dtype=compute_dtype,
                                vmem_budget_bytes=vmem_budget_bytes)
    return linear_forward_packed(x, params, batch_tile=batch_tile,
                                 vmem_budget_bytes=vmem_budget_bytes)


# --------------------------------------------------------------------------- demo / checks

if __name__ == "__main__":
    # --- 1) Module-implied small shapes (input_dim=32, output_dim=16, batch=8): lane-dense path.
    B, D_in, D_out = 8, 32, 16
    kx, kw, kb = jax.random.split(jax.random.PRNGKey(0), 3)
    x = jax.random.normal(kx, (B, D_in), dtype=jnp.float32)
    bound = 1.0 / jnp.sqrt(jnp.float32(D_in))
    weight = jax.random.uniform(kw, (D_out, D_in), jnp.float32, -bound, bound)
    bias = jax.random.uniform(kb, (D_out,), jnp.float32, -bound, bound)

    params = pack_linear_params(weight, bias)        # one-time prep, hoisted out of forward
    out = linear_forward_packed(x, params)
    jax.block_until_ready(out)
    ref = x @ weight.T + bias
    assert out.shape == (B, D_out)
    assert jnp.allclose(out, ref, atol=1e-5, rtol=1e-5)

    # --- 2) Ragged batch + D_out not dividing 128: still lane-dense via zero padding.
    B2, D_in2, D_out2 = 7, 32, 10
    k2 = jax.random.split(jax.random.PRNGKey(1), 3)
    x2 = jax.random.normal(k2[0], (B2, D_in2), dtype=jnp.float32)
    w2 = jax.random.normal(k2[1], (D_out2, D_in2), dtype=jnp.float32) * 0.1
    b2 = jax.random.normal(k2[2], (D_out2,), dtype=jnp.float32) * 0.1
    out2 = linear_forward(x2, w2, b2)
    jax.block_until_ready(out2)
    assert out2.shape == (B2, D_out2)
    assert jnp.allclose(out2, x2 @ w2.T + b2, atol=1e-5, rtol=1e-5)

    # --- 3) General path with N and K tiling (D_out=128, D_in=2048 -> TK=1024, 2 K steps).
    B3, D_in3, D_out3 = 16, 2048, 128
    k3 = jax.random.split(jax.random.PRNGKey(2), 3)
    x3 = jax.random.normal(k3[0], (B3, D_in3), dtype=jnp.float32)
    w3 = jax.random.normal(k3[1], (D_out3, D_in3), dtype=jnp.float32) * 0.02
    b3 = jax.random.normal(k3[2], (D_out3,), dtype=jnp.float32) * 0.02
    out3 = linear_forward(x3, w3, b3)
    jax.block_until_ready(out3)
    ref3 = jnp.dot(x3, w3.T, precision=jax.lax.Precision.HIGHEST) + b3
    assert out3.shape == (B3, D_out3)
    assert jnp.allclose(out3, ref3, atol=1e-3, rtol=1e-3)

    print("KERNEL_OK")
</pallas_src>

<mosaic_0001>
module attributes {stable_mosaic.version = 11 : i64} {
  func.func @_lane_dense_kernel(%arg0: i32, %arg1: memref<8x256xf32, #tpu.memory_space<vmem>>, %arg2: memref<256x128xf32, #tpu.memory_space<vmem>>, %arg3: memref<1x128xf32, #tpu.memory_space<vmem>>, %arg4: memref<8x128xf32, #tpu.memory_space<vmem>>) attributes {dimension_semantics = [#tpu.dimension_semantics<parallel>], iteration_bounds = array<i64: 1>, scalar_prefetch = 0 : i64, scratch_operands = 0 : i64, tpu.core_type = #tpu.core_type<tc>, window_params = [{transform_indices = @transform_0, window_bounds = array<i64: 8, 256>}, {pipeline_mode = #tpu.pipeline_mode<synchronous>, transform_indices = @transform_1, window_bounds = array<i64: 256, 128>}, {pipeline_mode = #tpu.pipeline_mode<synchronous>, transform_indices = @transform_2, window_bounds = array<i64: 1, 128>}, {transform_indices = @transform_3, window_bounds = array<i64: 8, 128>}]} {
    %c0 = arith.constant 0 : index
    %c0_0 = arith.constant 0 : index
    %0 = vector.load %arg1[%c0, %c0_0] : memref<8x256xf32, #tpu.memory_space<vmem>>, vector<8x256xf32>
    %c0_1 = arith.constant 0 : index
    %c0_2 = arith.constant 0 : index
    %1 = vector.load %arg2[%c0_1, %c0_2] : memref<256x128xf32, #tpu.memory_space<vmem>>, vector<256x128xf32>
    %cst = arith.constant dense<0.000000e+00> : vector<8x128xf32>
    %2 = tpu.matmul %0, %1, %cst {dimension_numbers = #tpu.dot_dimension_numbers<[1], [0], [0], [1], [0, 0, 1, 1], [], []>} : vector<8x256xf32>, vector<256x128xf32>, vector<8x128xf32> -> vector<8x128xf32>
    %c0_3 = arith.constant 0 : index
    %c0_4 = arith.constant 0 : index
    %3 = vector.load %arg3[%c0_3, %c0_4] : memref<1x128xf32, #tpu.memory_space<vmem>>, vector<1x128xf32>
    %4 = vector.broadcast %3 : vector<1x128xf32> to vector<8x128xf32>
    %5 = arith.addf %2, %4 : vector<8x128xf32>
    %c0_5 = arith.constant 0 : index
    %c0_6 = arith.constant 0 : index
    %6 = vector.load %arg4[%c0_5, %c0_6] : memref<8x128xf32, #tpu.memory_space<vmem>>, vector<8x128xf32>
    tpu.vector_store %arg4[%c0_5, %c0_6], %5 {strides = array<i32>} : memref<8x128xf32, #tpu.memory_space<vmem>>, vector<8x128xf32>,
    return
  }
  func.func @transform_0(%arg0: i32) -> (i32, i32) {
    %c0_i32 = arith.constant 0 : i32
    %c0_i32_0 = arith.constant 0 : i32
    return %arg0, %c0_i32 : i32, i32
  }
  func.func @transform_1(%arg0: i32) -> (i32, i32) {
    %c0_i32 = arith.constant 0 : i32
    %c0_i32_0 = arith.constant 0 : i32
    %c0_i32_1 = arith.constant 0 : i32
    return %c0_i32, %c0_i32_0 : i32, i32
  }
  func.func @transform_2(%arg0: i32) -> (i32, i32) {
    %c0_i32 = arith.constant 0 : i32
    %c0_i32_0 = arith.constant 0 : i32
    %c0_i32_1 = arith.constant 0 : i32
    return %c0_i32, %c0_i32_0 : i32, i32
  }
  func.func @transform_3(%arg0: i32) -> (i32, i32) {
    %c0_i32 = arith.constant 0 : i32
    %c0_i32_0 = arith.constant 0 : i32
    return %arg0, %c0_i32 : i32, i32
  }
}

</mosaic_0001>

<bundles_post_ra>
// kernel: tpu_custom_call.1
= control target key start
LH: loop header
LB: loop body
LE: loop exit
PB: predicated region body
PF: predicated region fallthrough
CT: control target
= control target key end

     0   :  { %8 = vsyncpa [#allocation3], 0  ;;  %s308_s0 = inlined_call_operand.hbm [shape: f32[1,256], index: 0, kind: input, shape index: {}]   ;;  %s309_s1 = inlined_call_operand.hbm [shape: f32[256,128], index: 1, kind: input, shape index: {}]   ;;  %s310_s2 = inlined_call_operand.vmem [shape: f32[1,128], index: 2, kind: input, shape index: {}]   ;;  %s311_s3 = inlined_call_operand.hbm [shape: f32[1,128], index: 3, kind: output, shape index: {}]  }
   0x1   :  { %9 = vsyncpa [#allocation6], 0 }
   0x2   :  { %10 = vsyncpa [#allocation4], 0 }
   0x3   :  { %14 = vsyncadd [#allocation3], 224  ;;  %s15_s14 = sshll.u32 %s308_s0, 4  ;;  %s267_s15 = smov [#allocation2]   ;;  %s16_s14 = int_to_ptr.hbm [resolvable:$true] %s15_s14 }
   0x4   :  { %s17_s16 = sshll.u32 %s267_s15, 4  ;;  %s28_s19 = sshll.u32 %s309_s1, 4  ;;  %s18_s16 = int_to_ptr.vmem [resolvable:$true] %s17_s16  ;;  %s29_s19 = int_to_ptr.hbm [resolvable:$true] %s28_s19 }
   0x5   :  { %s268_s20 = smov 32   ;;  %s269_s21 = smov 2  }
   0x6   :  { %23 = dma.hbm_to_vmem [thread:$0]  %s16_s14, 32, %s18_s16, [#allocation3], %s268_s20, %s268_s20, %s269_s21  }
   0x7   :  { %s270_s22 = smov [#allocation5]   ;;  %s271_s24 = smov 128  }
   0x8   :  { %s30_s23 = sshll.u32 %s270_s22, 4  ;;  %s272_s25 = smov 8   ;;  %s31_s23 = int_to_ptr.vmem [resolvable:$true] %s30_s23 }
   0x9   :  { %36 = dma.hbm_to_vmem [thread:$0]  %s29_s19, 4096, %s31_s23, [#allocation6], %s271_s24, %s271_s24, %s272_s25  }
   0xa   :  { %261 = dma.done.wait [#allocation3], 256  }
   0xb   :  { %262 = vsyncadd [#allocation3], 4294967040 }
   0xc   :  { %263 = dma.done.wait [#allocation6], 4096  }
   0xd   :  { %264 = vsyncadd [#allocation6], 4294963200  ;;  %v70_v0 = vld [vmem:[#allocation5 + $0x78] sm:$0xff]  ;;  %v69_v1 = vld [vmem:[#allocation5 + $0x70] sm:$0xff] }
   0xe   :  { %v86_v2 = vld [vmem:[#allocation5 + $0xf8] sm:$0xff]  ;;  %118 = vmatpush.msra.mxu0 %v70_v0  ;;  %v85_v3 = vld [vmem:[#allocation5 + $0xf0] sm:$0xff]  ;;  %v68_v4 = vld [vmem:[#allocation5 + $0x68] sm:$0xff] }
   0xf   :  { %138 = vmatpush.msra.mxu1 %v86_v2  ;;  %v84_v5 = vld [vmem:[#allocation5 + $0xe8] sm:$0xff]  ;;  %v67_v6 = vld [vmem:[#allocation5 + $0x60] sm:$0xff]  ;;  %v66_v8 = vld [vmem:[#allocation5 + $0x58] sm:$0xff] }
  0x10   :  { %119 = vmatpush.msra.mxu0 %v69_v1  ;;  %v83_v7 = vld [vmem:[#allocation5 + $0xe0] sm:$0xff]  ;;  %v82_v9 = vld [vmem:[#allocation5 + $0xd8] sm:$0xff]  ;;  %v65_v10 = vld [vmem:[#allocation5 + $0x50] sm:$0xff] }
  0x11   :  { %139 = vmatpush.msra.mxu1 %v85_v3  ;;  %v81_v11 = vld [vmem:[#allocation5 + $0xd0] sm:$0xff]  ;;  %v64_v12 = vld [vmem:[#allocation5 + $0x48] sm:$0xff]  ;;  %v63_v16 = vld [vmem:[#allocation5 + $0x40] sm:$0xff] }
  0x12   :  { %120 = vmatpush.msra.mxu0 %v68_v4  ;;  %v80_v13 = vld [vmem:[#allocation5 + $0xc8] sm:$0xff]  ;;  %v47_v14 = vld [vmem:[#allocation2] sm:$0x3]  ;;  %v48_v15 = vld [vmem:[#allocation2 + $0x2] sm:$0x3] }
  0x13   :  { %140 = vmatpush.msra.mxu1 %v84_v5  ;;  %v79_v17 = vld [vmem:[#allocation5 + $0xc0] sm:$0xff]  ;;  %v49_v18 = vld [vmem:[#allocation2 + $0x4] sm:$0x3]  ;;  %v50_v19 = vld [vmem:[#allocation2 + $0x6] sm:$0x3] }
  0x14   :  { %121 = vmatpush.msra.mxu0 %v67_v6  ;;  %99 = vst [vmem:[#allocation1] ss:$9 sm:$0xff] %v47_v14  ;;  %v62_v20 = vld [vmem:[#allocation5 + $0x38] sm:$0xff]  ;;  %v61_v24 = vld [vmem:[#allocation5 + $0x30] sm:$0xff]  ;;  %v60_v28 = vld [vmem:[#allocation5 + $0x28] sm:$0xff] }
  0x15   :  { %141 = vmatpush.msra.mxu1 %v83_v7  ;;  %v78_v21 = vld [vmem:[#allocation5 + $0xb8] sm:$0xff]  ;;  %101 = vst [vmem:[#allocation1 + $0x1] ss:$9 sm:$0xff] %v48_v15  ;;  %v77_v25 = vld [vmem:[#allocation5 + $0xb0] sm:$0xff]  ;;  %v76_v29 = vld [vmem:[#allocation5 + $0xa8] sm:$0xff] }
  0x16   :  { %122 = vmatpush.msra.mxu0 %v66_v8  ;;  %v51_v22 = vld [vmem:[#allocation2 + $0x8] sm:$0x3]  ;;  %v52_v23 = vld [vmem:[#allocation2 + $0xa] sm:$0x3]  ;;  %103 = vst [vmem:[#allocation1 + $0x2] ss:$9 sm:$0xff] %v49_v18 }
  0x17   :  { %142 = vmatpush.msra.mxu1 %v82_v9  ;;  %v53_v26 = vld [vmem:[#allocation2 + $0xc] sm:$0x3]  ;;  %105 = vst [vmem:[#allocation1 + $0x3] ss:$9 sm:$0xff] %v50_v19  ;;  %v54_v27 = vld [vmem:[#allocation2 + $0xe] sm:$0x3] }
  0x18   :  { %123 = vmatpush.msra.mxu0 %v65_v10  ;;  %107 = vst [vmem:[#allocation1 + $0x4] ss:$9 sm:$0xff] %v51_v22  ;;  %v59_v30 = vld [vmem:[#allocation5 + $0x20] sm:$0xff]  ;;  %v58_v32 = vld [vmem:[#allocation5 + $0x18] sm:$0xff]  ;;  %v57_v34 = vld [vmem:[#allocation5 + $0x10] sm:$0xff] }
  0x19   :  { %143 = vmatpush.msra.mxu1 %v81_v11  ;;  %109 = vst [vmem:[#allocation1 + $0x5] ss:$9 sm:$0xff] %v52_v23  ;;  %v75_v31 = vld [vmem:[#allocation5 + $0xa0] sm:$0xff]  ;;  %v74_v33 = vld [vmem:[#allocation5 + $0x98] sm:$0xff]  ;;  %v73_v35 = vld [vmem:[#allocation5 + $0x90] sm:$0xff] }
  0x1a   :  { %124 = vmatpush.msra.mxu0 %v64_v12  ;;  %111 = vst [vmem:[#allocation1 + $0x6] ss:$9 sm:$0xff] %v53_v26  ;;  %v56_v36 = vld [vmem:[#allocation5 + $0x8] sm:$0xff]  ;;  %v55_v38 = vld [vmem:[#allocation5] sm:$0xff] }
  0x1b   :  { %144 = vmatpush.msra.mxu1 %v80_v13  ;;  %113 = vst [vmem:[#allocation1 + $0x7] ss:$9 sm:$0xff] %v54_v27  ;;  %v72_v37 = vld [vmem:[#allocation5 + $0x88] sm:$0xff]  ;;  %v71_v39 = vld [vmem:[#allocation5 + $0x80] sm:$0xff] }
  0x1c   :  { %125 = vmatpush.msra.mxu0 %v63_v16  ;;  %v188_v42 = vld [vmem:[%s310_s2] ss:$0 sm:$0xff] }
  0x1d   :  { %145 = vmatpush.msra.mxu1 %v79_v17 }
  0x1e   :  { %126 = vmatpush.msra.mxu0 %v62_v20 }
  0x1f   :  { %146 = vmatpush.msra.mxu1 %v78_v21 }
  0x20   :  { %127 = vmatpush.msra.mxu0 %v61_v24 }
  0x21   :  { %147 = vmatpush.msra.mxu1 %v77_v25 }
  0x22   :  { %128 = vmatpush.msra.mxu0 %v60_v28  ;;  %v114_v40 = vld [vmem:[#allocation1] sm:$0xff]  ;;  %v115_v41 = vld [vmem:[#allocation1 + $0x9] sm:$0xff] }
  0x23   :  { %148 = vmatpush.msra.mxu1 %v76_v29 }
  0x24   :  { %129 = vmatpush.msra.mxu0 %v59_v30 }
  0x25   :  { %149 = vmatpush.msra.mxu1 %v75_v31 }
  0x26   :  { %130 = vmatpush.msra.mxu0 %v58_v32 }
  0x27   :  { %150 = vmatpush.msra.mxu1 %v74_v33 }
  0x28   :  { %131 = vmatpush.msra.mxu0 %v57_v34 }
  0x29   :  { %151 = vmatpush.msra.mxu1 %v73_v35 }
  0x2a   :  { %132 = vmatpush.msra.mxu0 %v56_v36 }
  0x2b   :  { %152 = vmatpush.msra.mxu1 %v72_v37 }
  0x2c   :  { %133 = vmatpush.msra.mxu0 %v55_v38 }
  0x2d   :  { %153 = vmatpush.msra.mxu1 %v71_v39  ;;  %134 = vmatmul.f32.vlgmr.msra.gmra.mxu0 %v114_v40 }
  0x2e   :  { %154 = vmatmul.f32.vlgmr.msra.gmra.mxu1 %v115_v41 }
  0xaa   :  { %v135_v43 = vpop.f32.mrf.mxu0 }
  0xab   :  { %v155_v44 = vpop.f32.mrf.mxu1  ;;  %v136_v45 = vadd.f32 %v188_v42, %v135_v43 }
  0xad   :  { %v156_v46 = vadd.f32 %v155_v44, %v136_v45 }
  0xaf   :  { %158 = vst [vmem:[#allocation7] sm:$0xff] %v156_v46 }
  0xb0   :  { %162 = vsyncadd [#allocation4], 112  ;;  %s165_s28 = sshll.u32 %s311_s3, 4  ;;  %s273_s29 = smov [#allocation7]   ;;  %s166_s28 = int_to_ptr.hbm [resolvable:$true] %s165_s28 }
  0xb1   :  { %s163_s30 = sshll.u32 %s273_s29, 4  ;;  %s274_s4 = smov 16   ;;  %s164_s30 = int_to_ptr.vmem [resolvable:$true] %s163_s30 }
  0xb2   :  { %s275_s5 = smov 1  }
  0xb3   :  { %171 = dma.vmem_to_hbm [thread:$0]  %s164_s30, 16, %s166_s28, [#allocation4], %s274_s4, %s274_s4, %s275_s5  }
  0xb4   :  { %265 = dma.done.wait [#allocation4], 128  }
  0xb5   :  { %266 = vsyncadd [#allocation4], 4294967168 }
  0xb6   :  { %176 = vsyncpa [#allocation3], 1 }
  0xb7   :  { %177 = vsyncpa [#allocation6], 1 }
  0xb8   :  { %178 = vsyncpa [#allocation4], 1 }

</bundles_post_ra>
